<compile_context>
chip_gen: v6e
topology: v6e:2x2x1
jax: 0.10.0
libtpu: 0.0.40
codegen_flags: <defaults>
</compile_context>

<pallas_src>
import math

import jax
import jax.numpy as jnp
from jax.experimental import pallas as pl
from jax.experimental.pallas import tpu as pltpu


def _decoder_pca_kernel(x_ref, w_ref, m_ref, o_ref):
    # One grid step computes a (tb, td) output tile:
    #   out_tile = x_tile @ w_tile + mean_tile   (MXU matmul, f32 acc, VPU add)
    acc = jnp.dot(x_ref[...], w_ref[...], preferred_element_type=jnp.float32)
    o_ref[...] = (acc + m_ref[...].astype(jnp.float32)).astype(o_ref.dtype)


def _vmem_capacity_bytes():
    try:
        return int(pltpu.get_tpu_info().vmem_capacity_bytes)
    except Exception:
        return 64 * 2**20  # conservative fallback (v7x per-core VMEM)


def _block_spec(shape, index_map, buffer_count=None):
    """BlockSpec with optional deeper pipelining, falling back if unsupported."""
    if buffer_count is not None:
        try:
            return pl.BlockSpec(shape, index_map,
                                pipeline_mode=pl.Buffered(buffer_count))
        except Exception:
            pass
    return pl.BlockSpec(shape, index_map)


def _footprint(tb, td, L, x_bytes, w_bytes, out_bytes):
    # Double-buffered VMEM bytes for one grid step's tiles.
    per_step = (tb * L * x_bytes + L * td * w_bytes + td * 4
                + tb * td * out_bytes)
    return 2 * per_step


def _choose_tiles(B, L, D, tb, td, x_bytes, w_bytes, out_bytes, budget):
    # Validate user tiles against the (8, 128) / full-dim rule.
    if tb is not None:
        tb = min(int(tb), B)
        if tb != B and tb % 8 != 0:
            raise ValueError(f"tb={tb} must be a multiple of 8 or equal B={B}")
    if td is not None:
        td = min(int(td), D)
        if td != D and td % 128 != 0:
            raise ValueError(f"td={td} must be a multiple of 128 or equal D={D}")

    auto_tb = tb is None
    auto_td = td is None
    if auto_tb:
        tb = B if B <= 512 else 512
    if auto_td:
        td = D if D <= 8192 else 8192

    # Shrink auto tiles (feature first, then batch) until the double-buffered
    # footprint fits the VMEM budget.  Shrunk tiles stay (8, 128)-aligned.
    while (auto_td and td > 128
           and _footprint(tb, td, L, x_bytes, w_bytes, out_bytes) > budget):
        td = max(128, ((td // 2) // 128) * 128)
    while (auto_tb and tb > 8
           and _footprint(tb, td, L, x_bytes, w_bytes, out_bytes) > budget):
        tb = max(8, ((tb // 2) // 8) * 8)

    # If everything fits in one grid step but the problem is non-trivial,
    # split one axis so v7x's second TensorCore gets a "parallel" step.
    if (auto_tb and auto_td and pl.cdiv(D, td) == 1 and pl.cdiv(B, tb) == 1
            and B >= 64):
        if D >= 256 and D % 256 == 0:
            td = D // 2               # stays a multiple of 128 (lane-dense)
        elif B % 16 == 0:
            tb = B // 2               # stays a multiple of 8

    return tb, td


def decoder_pca(x, matrix, mean, *, tb=None, td=None,
                weight_dtype=jnp.float32, out_dtype=jnp.float32):
    """Pallas TPU forward of DecoderPCA: x @ matrix + mean."""
    *lead, L = x.shape
    L2, D = matrix.shape
    assert L == L2, "latent dim mismatch"
    B = int(math.prod(lead))

    weight_dtype = jnp.dtype(weight_dtype)
    out_dtype = jnp.dtype(out_dtype)
    # bf16 weights -> also feed x in bf16 (native MXU bf16, half the x read);
    # accumulation and the mean add stay f32 inside the kernel.
    x_dtype = jnp.bfloat16 if weight_dtype == jnp.bfloat16 else jnp.float32

    x2 = x.reshape(B, L).astype(x_dtype)
    w = matrix.astype(weight_dtype)
    m = mean.reshape(1, D).astype(jnp.float32)

    x_bytes = jnp.dtype(x_dtype).itemsize
    w_bytes = weight_dtype.itemsize
    out_bytes = out_dtype.itemsize

    cap = _vmem_capacity_bytes()
    budget = int(0.70 * cap)       # cap on double-buffered tile footprint
    vmem_limit = int(0.80 * cap)   # scoped-VMEM limit (valid on v7x's 64 MiB)

    tb, td = _choose_tiles(B, L, D, tb, td, x_bytes, w_bytes, out_bytes, budget)

    n_ft = pl.cdiv(D, td)   # outer axis: feature tiles (weight resident inner)
    n_bt = pl.cdiv(B, tb)   # inner axis: batch tiles
    grid = (n_ft, n_bt)

    # Deeper pipelining on the batch-varying refs when steps are many & short.
    x_buf = 3 if (n_bt >= 3 and td <= 1024) else None

    cost = pl.CostEstimate(
        flops=2 * B * L * D,
        transcendentals=0,
        bytes_accessed=(B * L * x_bytes + L * D * w_bytes + 4 * D
                        + B * D * out_bytes),
    )

    out = pl.pallas_call(
        _decoder_pca_kernel,
        out_shape=jax.ShapeDtypeStruct((B, D), out_dtype),
        grid_spec=pltpu.PrefetchScalarGridSpec(
            num_scalar_prefetch=0,
            grid=grid,
            in_specs=[
                # x: batch tile i, full latent dim (L is small, keep resident)
                _block_spec((tb, L), lambda j, i: (i, 0), x_buf),
                # matrix: full latent dim, feature tile j -- block index is
                # constant over the inner batch axis, so each weight tile is
                # DMA'd from HBM once per outer step, not once per batch tile.
                pl.BlockSpec((L, td), lambda j, i: (0, j)),
                # mean: single broadcast row, feature tile j
                pl.BlockSpec((1, td), lambda j, i: (0, j)),
            ],
            out_specs=_block_spec((tb, td), lambda j, i: (i, j), x_buf),
        ),
        compiler_params=pltpu.CompilerParams(
            dimension_semantics=("parallel", "parallel"),
            vmem_limit_bytes=vmem_limit,
        ),
        cost_estimate=cost,
    )(x2, w, m)

    return out.reshape(*lead, D)


if __name__ == "__main__":
    key = jax.random.PRNGKey(0)
    k_x, k_w, k_b = jax.random.split(key, 3)

    # Small shapes consistent with the module: latents L=64, decoded feature
    # dim D=256, batch of 8 latent codes.  Synthetic "PCA" params stand in for
    # the module's .npy files.
    B, L, D = 8, 64, 256
    x = jax.random.normal(k_x, (B, L), dtype=jnp.float32)
    matrix = jax.random.normal(k_w, (L, D), dtype=jnp.float32) * 0.05
    mean = jax.random.normal(k_b, (D,), dtype=jnp.float32) * 0.1
    ref = x @ matrix + mean

    # 1) Default f32 path (exact module semantics).
    out = jax.block_until_ready(decoder_pca(x, matrix, mean))
    assert out.shape == (B, D)
    assert jnp.allclose(out, ref, atol=1e-5, rtol=1e-5), "f32 mismatch"

    # 2) Non-divisible shapes with explicit tiles: exercises the cdiv grid /
    #    masked edge blocks (no wrapper pad or output slice).
    B2, D2 = 10, 200
    xb = jax.random.normal(k_x, (B2, L), dtype=jnp.float32)
    wb = jax.random.normal(k_w, (L, D2), dtype=jnp.float32) * 0.05
    mb = jax.random.normal(k_b, (D2,), dtype=jnp.float32) * 0.1
    refb = xb @ wb + mb
    outb = jax.block_until_ready(decoder_pca(xb, wb, mb, tb=8, td=128))
    assert outb.shape == (B2, D2)
    assert jnp.allclose(outb, refb, atol=1e-5, rtol=1e-5), "edge-block mismatch"

    # 3) bf16 weight/activation path (halves the dominant weight HBM read);
    #    looser tolerance since inputs are rounded to bf16.
    out_bf = jax.block_until_ready(
        decoder_pca(x, matrix, mean, weight_dtype=jnp.bfloat16))
    assert jnp.allclose(out_bf, ref, atol=3e-2, rtol=3e-2), "bf16 mismatch"

    print("KERNEL_OK")
</pallas_src>

<mosaic_0001>
module attributes {stable_mosaic.version = 11 : i64} {
  func.func @_decoder_pca_kernel(%arg0: i32, %arg1: i32, %arg2: memref<8x64xf32, #tpu.memory_space<vmem>>, %arg3: memref<64x256xf32, #tpu.memory_space<vmem>>, %arg4: memref<1x256xf32, #tpu.memory_space<vmem>>, %arg5: memref<8x256xf32, #tpu.memory_space<vmem>>) attributes {dimension_semantics = [#tpu.dimension_semantics<parallel>, #tpu.dimension_semantics<parallel>], iteration_bounds = array<i64: 1, 1>, scalar_prefetch = 0 : i64, scratch_operands = 0 : i64, tpu.core_type = #tpu.core_type<tc>, window_params = [{transform_indices = @transform_0, window_bounds = array<i64: 8, 64>}, {transform_indices = @transform_1, window_bounds = array<i64: 64, 256>}, {transform_indices = @transform_2, window_bounds = array<i64: 1, 256>}, {transform_indices = @transform_3, window_bounds = array<i64: 8, 256>}]} {
    %c0 = arith.constant 0 : index
    %c0_0 = arith.constant 0 : index
    %0 = vector.load %arg2[%c0, %c0_0] : memref<8x64xf32, #tpu.memory_space<vmem>>, vector<8x64xf32>
    %c0_1 = arith.constant 0 : index
    %c0_2 = arith.constant 0 : index
    %1 = vector.load %arg3[%c0_1, %c0_2] : memref<64x256xf32, #tpu.memory_space<vmem>>, vector<64x256xf32>
    %cst = arith.constant dense<0.000000e+00> : vector<8x256xf32>
    %2 = tpu.matmul %0, %1, %cst {dimension_numbers = #tpu.dot_dimension_numbers<[1], [0], [0], [1], [0, 0, 1, 1], [], []>} : vector<8x64xf32>, vector<64x256xf32>, vector<8x256xf32> -> vector<8x256xf32>
    %c0_3 = arith.constant 0 : index
    %c0_4 = arith.constant 0 : index
    %3 = vector.load %arg4[%c0_3, %c0_4] : memref<1x256xf32, #tpu.memory_space<vmem>>, vector<1x256xf32>
    %4 = vector.broadcast %3 : vector<1x256xf32> to vector<8x256xf32>
    %5 = arith.addf %2, %4 : vector<8x256xf32>
    %c0_5 = arith.constant 0 : index
    %c0_6 = arith.constant 0 : index
    %6 = vector.load %arg5[%c0_5, %c0_6] : memref<8x256xf32, #tpu.memory_space<vmem>>, vector<8x256xf32>
    tpu.vector_store %arg5[%c0_5, %c0_6], %5 {strides = array<i32>} : memref<8x256xf32, #tpu.memory_space<vmem>>, vector<8x256xf32>,
    return
  }
  func.func @transform_0(%arg0: i32, %arg1: i32) -> (i32, i32) {
    %c0_i32 = arith.constant 0 : i32
    %c0_i32_0 = arith.constant 0 : i32
    return %arg1, %c0_i32 : i32, i32
  }
  func.func @transform_1(%arg0: i32, %arg1: i32) -> (i32, i32) {
    %c0_i32 = arith.constant 0 : i32
    %c0_i32_0 = arith.constant 0 : i32
    return %c0_i32, %arg0 : i32, i32
  }
  func.func @transform_2(%arg0: i32, %arg1: i32) -> (i32, i32) {
    %c0_i32 = arith.constant 0 : i32
    %c0_i32_0 = arith.constant 0 : i32
    return %c0_i32, %arg0 : i32, i32
  }
  func.func @transform_3(%arg0: i32, %arg1: i32) -> (i32, i32) {
    %c0_i32 = arith.constant 0 : i32
    return %arg1, %arg0 : i32, i32
  }
}

</mosaic_0001>

<bundles_post_ra>
// kernel: tpu_custom_call.1
= control target key start
LH: loop header
LB: loop body
LE: loop exit
PB: predicated region body
PF: predicated region fallthrough
CT: control target
= control target key end

     0   :  { %8 = vsyncpa [#allocation3], 0  ;;  %s274_s0 = inlined_call_operand.hbm [shape: f32[8,64], index: 0, kind: input, shape index: {}]   ;;  %s275_s1 = inlined_call_operand.hbm [shape: f32[64,256], index: 1, kind: input, shape index: {}]   ;;  %s276_s2 = inlined_call_operand.vmem [shape: f32[1,256], index: 2, kind: input, shape index: {}]   ;;  %s277_s3 = inlined_call_operand.hbm [shape: f32[8,256], index: 3, kind: output, shape index: {}]  }
   0x1   :  { %9 = vsyncpa [#allocation6], 0 }
   0x2   :  { %10 = vsyncpa [#allocation4], 0  ;;  %s236_s12 = smov [#allocation2]   ;;  %s237_s14 = smov [#allocation5]  }
   0x3   :  { %s17_s13 = sshll.u32 %s236_s12, 4  ;;  %s26_s15 = sshll.u32 %s237_s14, 4  ;;  %s18_s13 = int_to_ptr.vmem [resolvable:$true] %s17_s13  ;;  %s27_s15 = int_to_ptr.vmem [resolvable:$true] %s26_s15 }
   0x4   :  { %s178_s16 = scalar_lea.vmem %s18_s13, 128  ;;  %p183_p1 = scmp.lt.s32.totalorder %s18_s13, %s18_s13 }
   0x5   :  { %p179_p0 = scmp.ne.s32.totalorder %s18_s13, %s178_s16  ;;  %p184_p2 = scmp.lt.s32.totalorder %s178_s16, %s178_s16 }
   0x7   :  { %p185_p3 = por %p184_p2, %p183_p1 }
   0x9   :  { %p186_p4 = pnand %p185_p3, %p179_p0 }
   0xb   :  { %189 = shalt.err (!%p186_p4)
}
   0xc   :  { %20 = dma.hbm_to_vmem [thread:$0]  %s274_s0, 128, %s18_s13, [#allocation3]  }
   0xd   :  { %s198_s19 = scalar_lea.vmem %s27_s15, 2048  ;;  %p203_p6 = scmp.lt.s32.totalorder %s27_s15, %s27_s15 }
   0xe   :  { %p199_p5 = scmp.ne.s32.totalorder %s27_s15, %s198_s19  ;;  %p204_p7 = scmp.lt.s32.totalorder %s198_s19, %s198_s19 }
  0x10   :  { %p205_p8 = por %p204_p7, %p203_p6 }
  0x12   :  { %p206_p9 = pnand %p205_p8, %p199_p5 }
  0x14   :  { %209 = shalt.err (!%p206_p9)
}
  0x15   :  { %s238_s20 = smov 256   ;;  %s239_s21 = smov 16  }
  0x16   :  { %32 = dma.hbm_to_vmem [thread:$0]  %s275_s1, 2048, %s27_s15, [#allocation6], %s238_s20, %s238_s20, %s239_s21  }
  0x17   :  { %230 = dma.done.wait [#allocation3], 128  }
  0x18   :  { %231 = vsyncadd [#allocation3], 4294967168 }
  0x19   :  { %232 = dma.done.wait [#allocation6], 2048  }
  0x1a   :  { %233 = vsyncadd [#allocation6], 4294965248  ;;  %v240_v0 = vmov 0.0   ;;  %v57_v1 = vld [vmem:[#allocation5 + $0x78] sm:$0xff]  ;;  %v56_v2 = vld [vmem:[#allocation5 + $0x70] sm:$0xff]  ;;  %vm70_vm0 = vcmask 523264   ;;  %v60_v18 = vlaneseq }
  0x1b   :  { %138 = vmatprep.mubr.f32.mxu0 %v240_v0  ;;  %v55_v3 = vld [vmem:[#allocation5 + $0x68] sm:$0xff]  ;;  %90 = vmatprep.subr.mxu0 %v57_v1  ;;  %v54_v4 = vld [vmem:[#allocation5 + $0x60] sm:$0xff]  ;;  %v53_v5 = vld [vmem:[#allocation5 + $0x58] sm:$0xff]  ;;  %s241_s24 = smov [#allocation7]  }
  0x1c   :  { %91 = vmatpush1.msra.mxu0 %v56_v2  ;;  %v52_v6 = vld [vmem:[#allocation5 + $0x50] sm:$0xff]  ;;  %v51_v7 = vld [vmem:[#allocation5 + $0x48] sm:$0xff]  ;;  %v50_v8 = vld [vmem:[#allocation5 + $0x40] sm:$0xff]  ;;  %v61_v19 = vshrl.u32 %v60_v18, 7  ;;  %s153_s25 = sshll.u32 %s241_s24, 4  ;;  %s154_s25 = int_to_ptr.vmem [resolvable:$true] %s153_s25 }
  0x1d   :  { %92 = vmatprep.subr.mxu0 %v55_v3  ;;  %v49_v9 = vld [vmem:[#allocation5 + $0x38] sm:$0xff]  ;;  %v48_v10 = vld [vmem:[#allocation5 + $0x30] sm:$0xff]  ;;  %v47_v11 = vld [vmem:[#allocation5 + $0x28] sm:$0xff]  ;;  %s210_s26 = scalar_lea.vmem %s154_s25, 256  ;;  %p215_p11 = scmp.lt.s32.totalorder %s154_s25, %s154_s25 }
  0x1e   :  { %93 = vmatpush1.msra.mxu0 %v54_v4  ;;  %v46_v12 = vld [vmem:[#allocation5 + $0x20] sm:$0xff]  ;;  %v45_v13 = vld [vmem:[#allocation5 + $0x18] sm:$0xff]  ;;  %v44_v14 = vld [vmem:[#allocation5 + $0x10] sm:$0xff]  ;;  %v62_v20 = vsub.s32 0, %v61_v19  ;;  %v66_v22 = vsub.s32 1, %v61_v19  ;;  %p211_p10 = scmp.ne.s32.totalorder %s154_s25, %s210_s26  ;;  %p216_p12 = scmp.lt.s32.totalorder %s210_s26, %s210_s26 }
  0x1f   :  { %94 = vmatprep.subr.mxu0 %v53_v5  ;;  %v43_v15 = vld [vmem:[#allocation5 + $0x8] sm:$0xff]  ;;  %v42_v16 = vld [vmem:[#allocation5] sm:$0xff]  ;;  %v41_v17 = vld [vmem:[#allocation2] sm:$0xff] }
  0x20   :  { %95 = vmatpush1.msra.mxu0 %v52_v6  ;;  %v58_v21 = vld [vmem:[%s276_s2] sm:$0x3]  ;;  %p217_p13 = por %p216_p12, %p215_p11 }
  0x21   :  { %96 = vmatprep.subr.mxu0 %v51_v7  ;;  %v63_v23 = vrot.slane %v58_v21, %v62_v20  ;;  %v67_v24 = vrot.slane %v58_v21, %v66_v22 }
  0x22   :  { %97 = vmatpush1.msra.mxu0 %v50_v8  ;;  %p218_p0 = pnand %p217_p13, %p211_p10 }
  0x23   :  { %98 = vmatprep.subr.mxu0 %v49_v9 }
  0x24   :  { %99 = vmatpush1.msra.mxu0 %v48_v10 }
  0x25   :  { %100 = vmatprep.subr.mxu0 %v47_v11 }
  0x26   :  { %101 = vmatpush1.msra.mxu0 %v46_v12 }
  0x27   :  { %102 = vmatprep.subr.mxu0 %v45_v13 }
  0x28   :  { %103 = vmatpush1.msra.mxu0 %v44_v14 }
  0x29   :  { %104 = vmatprep.subr.mxu0 %v43_v15 }
  0x2a   :  { %105 = vmatpush1.msra.mxu0 %v42_v16 }
  0x2b   :  { %163 = vmatmul.mubr.msk.f32.vlgmr.msra.gmra.mxu0 %vm70_vm0, %v41_v17 }
  0xeb   :  { %v140_v25 = vpop.f32.mrf.mxu0 }
  0xec   :  { %v141_v26 = vadd.f32 %v140_v25, %v63_v23 }
  0xed   :  { %v142_v27 = vpop.f32.mrf.mxu0 }
  0xee   :  { %145 = vst [vmem:[#allocation7] sm:$0xff] %v141_v26  ;;  %v143_v28 = vadd.f32 %v142_v27, %v67_v24 }
  0xf0   :  { %146 = vst [vmem:[#allocation7 + $0x8] sm:$0xff] %v143_v28 }
  0xf1   :  { %221 = shalt.err (!%p218_p0)
}
  0xf2   :  { %156 = dma.vmem_to_hbm [thread:$0]  %s154_s25, 256, %s277_s3, [#allocation4]  }
  0xf3   :  { %234 = dma.done.wait [#allocation4], 256  }
  0xf4   :  { %235 = vsyncadd [#allocation4], 4294967040 }
  0xf5   :  { %160 = vsyncpa [#allocation3], 1 }
  0xf6   :  { %161 = vsyncpa [#allocation6], 1 }
  0xf7   :  { %162 = vsyncpa [#allocation4], 1 }

</bundles_post_ra>
